<compile_context>
chip_gen: v7x
topology: tpu7x:2x2x1
jax: 0.10.0
libtpu: 0.0.40
codegen_flags: <defaults>
</compile_context>

<pallas_src>
import math

import jax
import jax.numpy as jnp
from jax.experimental import pallas as pl
from jax.experimental.pallas import tpu as pltpu


def _banded_blur_matrix(size: int, g1, m: int):
    """A[p, q] = sum_{j : clamp(p + j - m, 0, size-1) == q} g1[j].

    One application of A along an axis == 1D Gaussian blur with replicate
    padding along that axis (duplicate clamped indices accumulate the edge
    weights, exactly like 'replicate' pad + valid conv).
    """
    ks = g1.shape[0]
    rows = jnp.arange(size, dtype=jnp.int32)[:, None]                      # (size, 1)
    offs = (jnp.arange(ks, dtype=jnp.int32) - m)[None, :]                  # (1, ks)
    cols = jnp.clip(rows + offs, 0, size - 1)                              # (size, ks)
    vals = jnp.broadcast_to(g1.astype(jnp.float32)[None, :], (size, ks))
    mat = jnp.zeros((size, size), jnp.float32)
    return mat.at[jnp.broadcast_to(rows, (size, ks)), cols].add(vals)


def _blur_kernel(ah_ref, awt_ref, x_ref, o_ref):
    # ah_ref  : (H, H) banded vertical-pass matrix (taps + replicate pad folded in)
    # awt_ref : (W, W) banded horizontal-pass matrix, already transposed
    # x_ref   : (H, W) one channel plane of one image
    # o_ref   : (H, W)
    t = jnp.dot(ah_ref[...], x_ref[...], preferred_element_type=jnp.float32)
    t = t.astype(awt_ref.dtype)          # keep MXU operands homogeneous (no-op for f32)
    o = jnp.dot(t, awt_ref[...], preferred_element_type=jnp.float32)
    o_ref[...] = o.astype(o_ref.dtype)


def my_blur(x, sigma, kernel_size: int = 13):
    """Pallas equivalent of myBlur.forward(x, sigma, gpu)."""
    ks = int(int(kernel_size / 2) * 2) + 1
    m = (ks - 1) // 2
    N, C, H, W = x.shape

    # Separable 1D taps; outer(g1, g1) == the module's normalized 2D Gaussian.
    sig = jnp.asarray(sigma, jnp.float32) * 8.0 + 16.0
    var = sig * sig
    coords = jnp.arange(ks, dtype=jnp.float32) - m
    g1 = jnp.exp(-(coords ** 2) / (2.0 * var))
    g1 = g1 / jnp.sum(g1)                                                 # (ks,), f32

    # bf16 inputs -> bf16 MXU operands (packed vregs); otherwise keep f32.
    mat_dtype = jnp.bfloat16 if x.dtype == jnp.bfloat16 else jnp.float32
    a_h = _banded_blur_matrix(H, g1, m).astype(mat_dtype)                 # (H, H)
    a_wt = _banded_blur_matrix(W, g1, m).T.astype(mat_dtype)              # (W, W)

    # --- adaptive scoped-VMEM budget, capped by the actual chip capacity -----
    xs = jnp.dtype(x.dtype).itemsize
    ms = jnp.dtype(mat_dtype).itemsize
    vmem_need = (2 * (H * H + W * W) * ms      # resident banded matrices (+buffer slack)
                 + 2 * 2 * H * W * xs          # double-buffered in/out plane blocks
                 + 4 * H * W * 4               # f32 matmul temporaries
                 + (1 << 20))                  # misc slack
    try:
        vmem_cap = int(pltpu.get_tpu_info().vmem_capacity_bytes)
    except Exception:
        vmem_cap = 64 * 1024 * 1024            # conservative fallback (v7x per-TC)
    vmem_limit = int(min(max(vmem_need, 32 * 1024 * 1024), int(vmem_cap * 0.9)))

    cost = pl.CostEstimate(
        flops=2 * N * C * (H * H * W + H * W * W),
        transcendentals=0,
        bytes_accessed=2 * N * C * H * W * xs + (H * H + W * W) * ms,
    )

    # TODO(synk): for planes where the per-step blocks + (H,H)/(W,W) matrices no
    # longer fit per-core VMEM (e.g. >=1080p f32 on v7x's 64 MiB), halo-tile H:
    # out block (None, None, tH, W) with an A_H block of (tH, H) on a third grid axis.
    # TODO(synk): for very narrow images (W << 128) a wrapper transpose putting the
    # wider spatial axis on lanes would avoid masked vst on the output tail.

    return pl.pallas_call(
        _blur_kernel,
        out_shape=jax.ShapeDtypeStruct((N, C, H, W), x.dtype),
        grid=(N, C),
        in_specs=[
            pl.BlockSpec((H, H), lambda n, c: (0, 0)),                    # A_H (resident)
            pl.BlockSpec((W, W), lambda n, c: (0, 0)),                    # A_W^T (resident)
            pl.BlockSpec((None, None, H, W), lambda n, c: (n, c, 0, 0)),  # one plane
        ],
        out_specs=pl.BlockSpec((None, None, H, W), lambda n, c: (n, c, 0, 0)),
        compiler_params=pltpu.CompilerParams(
            dimension_semantics=("parallel", "parallel"),
            vmem_limit_bytes=vmem_limit,
        ),
        cost_estimate=cost,
    )(a_h, a_wt, x)


def _reference_blur(x, sigma, kernel_size: int = 13):
    """Pure-JAX reference (replicate pad + lax depthwise conv, 2D kernel)."""
    ks = int(int(kernel_size / 2) * 2) + 1
    mean = (ks - 1) // 2
    coords = jnp.arange(ks, dtype=jnp.float32)
    x_grid = jnp.tile(coords, ks).reshape(ks, ks)
    y_grid = x_grid.T
    diff = -jnp.sum((jnp.stack([x_grid, y_grid], -1) - mean) ** 2.0, -1)
    s = jnp.asarray(sigma, jnp.float32) * 8.0 + 16.0
    var = s ** 2.0
    gk = 1.0 / (2.0 * math.pi * var) * jnp.exp(diff / (2.0 * var))
    gk = gk / jnp.sum(gk)
    C = x.shape[1]
    w = jnp.broadcast_to(gk[None, None], (C, 1, ks, ks))     # (O=C, I/g=1, kh, kw)
    xpad = jnp.pad(x, ((0, 0), (0, 0), (mean, mean), (mean, mean)), mode="edge")
    return jax.lax.conv_general_dilated(
        xpad, w, window_strides=(1, 1), padding="VALID",
        dimension_numbers=("NCHW", "OIHW", "NCHW"), feature_group_count=C)


if __name__ == "__main__":
    key = jax.random.PRNGKey(0)
    N, C, H, W = 2, 3, 16, 16            # channels=3 matches the module default
    x = jax.random.normal(key, (N, C, H, W), dtype=jnp.float32)
    sigma = 0.5                          # scalar sigma, as in forward(x, sigma, gpu)

    out = jax.block_until_ready(my_blur(x, sigma))
    ref = jax.block_until_ready(_reference_blur(x, sigma))

    assert out.shape == (N, C, H, W)
    err = float(jnp.max(jnp.abs(out - ref)))
    # MXU DEFAULT precision rounds f32 matmul operands to bf16 (in this kernel
    # and potentially in the XLA reference conv); realistic deviation is a few
    # 1e-3, while any structural/indexing bug would be >> 5e-2, so 2e-2 is a
    # safe-but-discriminating tolerance.
    assert err < 2e-2, f"mismatch vs reference conv: {err}"

    print("KERNEL_OK")
</pallas_src>

<mosaic_0001>
module attributes {stable_mosaic.version = 11 : i64} {
  func.func @_blur_kernel(%arg0: i32, %arg1: i32, %arg2: memref<16x16xf32, #tpu.memory_space<vmem>>, %arg3: memref<16x16xf32, #tpu.memory_space<vmem>>, %arg4: memref<1x1x16x16xf32, #tpu.memory_space<vmem>>, %arg5: memref<1x1x16x16xf32, #tpu.memory_space<vmem>>) attributes {dimension_semantics = [#tpu.dimension_semantics<parallel>, #tpu.dimension_semantics<parallel>], iteration_bounds = array<i64: 2, 3>, scalar_prefetch = 0 : i64, scratch_operands = 0 : i64, tpu.core_type = #tpu.core_type<tc>, window_params = [{pipeline_mode = #tpu.pipeline_mode<synchronous>, transform_indices = @transform_0, window_bounds = array<i64: 16, 16>}, {pipeline_mode = #tpu.pipeline_mode<synchronous>, transform_indices = @transform_1, window_bounds = array<i64: 16, 16>}, {transform_indices = @transform_2, window_bounds = array<i64: 1, 1, 16, 16>}, {transform_indices = @transform_3, window_bounds = array<i64: 1, 1, 16, 16>}]} {
    %c0 = arith.constant 0 : index
    %c0_0 = arith.constant 0 : index
    %0 = vector.load %arg2[%c0, %c0_0] : memref<16x16xf32, #tpu.memory_space<vmem>>, vector<16x16xf32>
    %c0_1 = arith.constant 0 : index
    %c0_2 = arith.constant 0 : index
    %c0_3 = arith.constant 0 : index
    %c0_4 = arith.constant 0 : index
    %1 = vector.load %arg4[%c0_1, %c0_2, %c0_3, %c0_4] : memref<1x1x16x16xf32, #tpu.memory_space<vmem>>, vector<1x1x16x16xf32>
    %2 = vector.shape_cast %1 : vector<1x1x16x16xf32> to vector<16x16xf32>
    %cst = arith.constant dense<0.000000e+00> : vector<16x16xf32>
    %3 = tpu.matmul %0, %2, %cst {dimension_numbers = #tpu.dot_dimension_numbers<[1], [0], [0], [1], [0, 0, 1, 1], [], []>} : vector<16x16xf32>, vector<16x16xf32>, vector<16x16xf32> -> vector<16x16xf32>
    %c0_5 = arith.constant 0 : index
    %c0_6 = arith.constant 0 : index
    %4 = vector.load %arg3[%c0_5, %c0_6] : memref<16x16xf32, #tpu.memory_space<vmem>>, vector<16x16xf32>
    %cst_7 = arith.constant dense<0.000000e+00> : vector<16x16xf32>
    %5 = tpu.matmul %3, %4, %cst_7 {dimension_numbers = #tpu.dot_dimension_numbers<[1], [0], [0], [1], [0, 0, 1, 1], [], []>} : vector<16x16xf32>, vector<16x16xf32>, vector<16x16xf32> -> vector<16x16xf32>
    %c0_8 = arith.constant 0 : index
    %c0_9 = arith.constant 0 : index
    %c0_10 = arith.constant 0 : index
    %c0_11 = arith.constant 0 : index
    %6 = vector.load %arg5[%c0_8, %c0_9, %c0_10, %c0_11] : memref<1x1x16x16xf32, #tpu.memory_space<vmem>>, vector<1x1x16x16xf32>
    %7 = vector.shape_cast %6 : vector<1x1x16x16xf32> to vector<16x16xf32>
    %8 = vector.shape_cast %5 : vector<16x16xf32> to vector<1x1x16x16xf32>
    tpu.vector_store %arg5[%c0_8, %c0_9, %c0_10, %c0_11], %8 {strides = array<i32>} : memref<1x1x16x16xf32, #tpu.memory_space<vmem>>, vector<1x1x16x16xf32>,
    return
  }
  func.func @transform_0(%arg0: i32, %arg1: i32) -> (i32, i32) {
    %c0_i32 = arith.constant 0 : i32
    %c0_i32_0 = arith.constant 0 : i32
    %c0_i32_1 = arith.constant 0 : i32
    return %c0_i32, %c0_i32_0 : i32, i32
  }
  func.func @transform_1(%arg0: i32, %arg1: i32) -> (i32, i32) {
    %c0_i32 = arith.constant 0 : i32
    %c0_i32_0 = arith.constant 0 : i32
    %c0_i32_1 = arith.constant 0 : i32
    return %c0_i32, %c0_i32_0 : i32, i32
  }
  func.func @transform_2(%arg0: i32, %arg1: i32) -> (i32, i32, i32, i32) {
    %c0_i32 = arith.constant 0 : i32
    %c0_i32_0 = arith.constant 0 : i32
    %c0_i32_1 = arith.constant 0 : i32
    return %arg0, %arg1, %c0_i32, %c0_i32_0 : i32, i32, i32, i32
  }
  func.func @transform_3(%arg0: i32, %arg1: i32) -> (i32, i32, i32, i32) {
    %c0_i32 = arith.constant 0 : i32
    %c0_i32_0 = arith.constant 0 : i32
    %c0_i32_1 = arith.constant 0 : i32
    return %arg0, %arg1, %c0_i32, %c0_i32_0 : i32, i32, i32, i32
  }
}

</mosaic_0001>

<bundles_post_ra>
// kernel: tpu_custom_call.1
= control target key start
LH: loop header
LB: loop body
LE: loop exit
PB: predicated region body
PF: predicated region fallthrough
CT: control target
= control target key end

     0   :  { %s1213_s0 = inlined_call_operand.hbm [shape: f32[16,16], index: 0, kind: input, shape index: {}]   ;;  %s1214_s1 = inlined_call_operand.hbm [shape: f32[16,16], index: 1, kind: input, shape index: {}]   ;;  %s1215_s2 = inlined_call_operand.hbm [shape: f32[2,3,16,16], index: 2, kind: input, shape index: {}]   ;;  %s1216_s3 = inlined_call_operand.hbm [shape: f32[2,3,16,16], index: 3, kind: output, shape index: {}]  }
   0x1   :  { %1223 = sst [smem:[#allocation14_spill]] %s1213_s0 }
   0x2   :  { %1224 = sst [smem:[#allocation15_spill]] %s1214_s1 }
   0x3   :  { %8 = vsyncpa [#allocation3], 0 }
   0x4   :  { %9 = vsyncpa [#allocation6], 0 }
   0x5   :  { %10 = vsyncpa [#allocation4], 0 }
   0x6   :  { %12 = vsyncpa [#allocation4 + $0x1], 0  ;;  %s910_s12 = smov 0   ;;  %s912_s13 = smov 0  }
   0x7   :  { %s914_s14 = smov 0   ;;  %s916_s15 = smov 0  }
   0x8   :  { %s918_s16 = smov 0   ;;  %s920_s17 = smov 0  }
   0x9   :  { %s922_s18 = smov 0   ;;  %s924_s19 = smov 0  }
   0xa LB: > { %s951_s20 = sadd.s32 4294967295, %s880_s19   ;;  %s531_s21 = sadd.s32 4294967294, %s880_s19   ;;  %s880_s19 = sphi %s924_s19, %s18_s19   ;;  %s876_s18 = sphi %s922_s18, %s1253_s18   ;;  %s872_s17 = sphi %s920_s17, %s1252_s17   ;;  %s868_s16 = sphi %s918_s16, %s1251_s16   ;;  %s864_s15 = sphi %s916_s15, %s1250_s15   ;;  %s860_s14 = sphi %s914_s14, %s1249_s14   ;;  %s856_s13 = sphi %s912_s13, %s1248_s13   ;;  %s852_s12 = sphi %s910_s12, %s1247_s12  }
   0xb   : > { %p88_p0 = scmp.ne.s32.totalorder %s860_s14, %s856_s13  ;;  %p89_p1 = scmp.eq.s32.totalorder %s880_s19, 0 }
   0xc   : > { %p94_p2 = scmp.ne.s32.totalorder %s856_s13, %s852_s12  ;;  %p1217_p3 = scmp.eq.s32.totalorder %s951_s20, 0 }
   0xd   : > { %p120_p4 = scmp.eq.s32.totalorder %s951_s20, 5  ;;  %p962_p5 = por %p89_p1, %p88_p0 }
   0xe   : > { %p126_p6 = scmp.eq.s32.totalorder %s531_s21, 5  ;;  %p968_p7 = por %p1217_p3, %p94_p2 }
   0xf   : > { %p972_p8 = por %p120_p4, %p88_p0  ;;  %p532_p10 = scmp.ge.s32.totalorder %s880_s19, 1 }
  0x10   : > { %s1226_s24 = scalar_select %p968_p7, 1, 0 }
  0x11   : > { %s1227_s25 = scalar_select %p972_p8, 1, 0 }
  0x12   : > { %p976_p9 = por %p126_p6, %p94_p2  ;;  %p133_p11 = scmp.lt.s32.totalorder %s880_s19, 7 }
  0x13   : > { %s882_s28 = smov [#allocation2]   ;;  %p614_p0 = scmp.lt.s32.totalorder %s880_s19, 6 }
  0x14   : > { %s1228_s26 = scalar_select %p976_p9, 1, 0 }
  0x15   : > { %p982_p12 = pnand %p532_p10, %p133_p11  ;;  %s145_s29 = sshll.u32 %s882_s28, 4  ;;  %s986_s29 = int_to_ptr.vmem [resolvable:$true] %s145_s29 }
  0x16   : > { %1229 = sst [smem:[#allocation13_spill]] %s1228_s26  ;;  %s883_s4 = smov [#allocation5]  }
  0x17   : > { %p597_p13 = pneg %p982_p12  ;;  %s158_s5 = sshll.u32 %s883_s4, 4  ;;  %s1003_s5 = int_to_ptr.vmem [resolvable:$true] %s158_s5 }
  0x18   : > { %p999_p2 = pnand %p614_p0, %p962_p5  ;;  %s1233_s0 = sld [smem:[#allocation14_spill]] }
  0x19   : > { %p993_p1 = pnand %p597_p13, %p1217_p3 }
  0x1b   : > { %p690_p6 = pneg %p993_p1 }
  0x1e   : > { %s688_s9 = scalar_lea.hbm %s1233_s0, 256 }
  0x1f   : > { %p689_p4 = scmp.ne.s32.totalorder %s1233_s0, %s688_s9  ;;  %p695_p5 = scmp.lt.u32.totalorder %s688_s9, %s1233_s0 }
  0x21   : > { %p691_p10 = pnand %p690_p6, %p689_p4 }
  0x23   : > { %p692_p11 = pneg %p691_p10 }
  0x25   : > { %p697_p13 = pnand %p695_p5, %p692_p11 }
  0x27   : > { %700 = shalt.err (!%p697_p13)
}
  0x28   : > { %s701_s28 = scalar_lea.vmem %s986_s29, 256  ;;  %p709_p8 = scmp.lt.s32.totalorder %s986_s29, %s986_s29 }
  0x29   : > { %p702_p0 = scmp.ne.s32.totalorder %s986_s29, %s701_s28  ;;  %p710_p4 = scmp.lt.s32.totalorder %s701_s28, %s701_s28 }
  0x2b   : > { %p704_p3 = pnand %p702_p0, %p690_p6  ;;  %p711_p10 = por %p710_p4, %p709_p8 }
  0x2d   : > { %p705_p9 = pneg %p704_p3 }
  0x2f   : > { %p712_p7 = pnand %p711_p10, %p705_p9 }
  0x31   : > { %715 = shalt.err (!%p712_p7)
}
  0x32   : > { %s1221_s4 = smov 128   ;;  %s1222_s7 = smov 8  }
  0x33   : > { %600 = dma.hbm_to_vmem [thread:$0]  (!%p993_p1), %s1233_s0, 256, %s986_s29, [#allocation3], %s1221_s4, %s1221_s4, %s1222_s7  }
  0x34   : > { %s1234_s1 = sld [smem:[#allocation15_spill]] }
  0x3a   : > { %s716_s21 = scalar_lea.hbm %s1234_s1, 256 }
  0x3b   : > { %p717_p3 = scmp.ne.s32.totalorder %s1234_s1, %s716_s21  ;;  %p723_p9 = scmp.lt.u32.totalorder %s716_s21, %s1234_s1 }
  0x3d   : > { %p719_p7 = pnand %p717_p3, %p690_p6 }
  0x3f   : > { %p720_p8 = pneg %p719_p7 }
  0x41   : > { %p725_p11 = pnand %p723_p9, %p720_p8 }
  0x43   : > { %728 = shalt.err (!%p725_p11)
}
  0x44   : > { %s729_s29 = scalar_lea.vmem %s1003_s5, 256  ;;  %p737_p4 = scmp.lt.s32.totalorder %s1003_s5, %s1003_s5 }
  0x45   : > { %p730_p5 = scmp.ne.s32.totalorder %s1003_s5, %s729_s29  ;;  %p738_p10 = scmp.lt.s32.totalorder %s729_s29, %s729_s29 }
  0x47   : > { %p732_p13 = pnand %p730_p5, %p690_p6  ;;  %p739_p3 = por %p738_p10, %p737_p4 }
  0x49   : > { %p733_p0 = pneg %p732_p13 }
  0x4b   : > { %p740_p7 = pnand %p739_p3, %p733_p0 }
  0x4d   : > { %743 = shalt.err (!%p740_p7)
}
  0x4e   : > { %603 = dma.hbm_to_vmem [thread:$0]  (!%p993_p1), %s1234_s1, 256, %s1003_s5, [#allocation6], %s1221_s4, %s1221_s4, %s1222_s7  }
  0x4f   : > { %s27_s8 = sadd.s32 1, %s872_s17  ;;  %s30_s9 = sadd.s32 1, %s876_s18 }
  0x50   : > { %p28_p6 = scmp.ge.s32.totalorder %s27_s8, 3  ;;  %s172_s30 = sand.u32 1, %s880_s19  }
  0x51   : > { %s174_s10 = sand.u32 1, %s860_s14   ;;  %s537_s23 = sshll.u32 %s872_s17, 1 }
  0x52   : > { %s1255_s8 = smov (%p28_p6, %s27_s8), 0  ;;  %s1257_s9 = smov (!%p28_p6, %s30_s9), %s876_s18 }
  0x53   : > { %s77_s11 = ssub.s32 %s872_s17, %s1255_s8  ;;  %s536_s21 = sshll.u32 %s174_s10, 4 }
  0x54   : > { %p32_p8 = scmp.ge.s32.totalorder %s1257_s9, 2  ;;  %s583_s28 = smul.u32 6, %s876_s18 }
  0x55   : > { %s176_s29 = scalar_lea.vmem [#allocation7], %s536_s21  ;;  %p746_p11 = pneg %p999_p2 }
  0x56   : > { %s1259_s9 = smov (%p32_p8, %s1257_s9), 0  ;;  %s182_s5 = sadd.s32 %s583_s28, %s537_s23 }
  0x57   : > { %s185_s22 = sshll.u32 %s176_s29, 4  ;;  %s76_s26 = ssub.s32 %s876_s18, %s1259_s9  ;;  %s1086_s22 = int_to_ptr.vmem [resolvable:$true] %s185_s22 }
  0x58   : > { %s538_s4 = sshll.u32 %s182_s5, 7  ;;  %s1078_s7 = sor.u32 %s77_s11, %s76_s26 }
  0x59   : > { %s1083_s10 = scalar_lea.hbm %s1215_s2, %s538_s4  ;;  %s1088_s23 = scalar_lea.sflag [#allocation3], %s172_s30 }
  0x5a   : > { %s744_s21 = scalar_lea.hbm %s1083_s10, 256  ;;  %s749_s4 = scalar_lea.hbm %s1215_s2, 1536 }
  0x5b   : > { %p745_p9 = scmp.ne.s32.totalorder %s1083_s10, %s744_s21  ;;  %p750_p0 = scmp.lt.u32.totalorder %s1083_s10, %s1215_s2 }
  0x5c   : > { %p751_p4 = scmp.lt.u32.totalorder %s749_s4, %s744_s21  ;;  %p753_p3 = scmp.lt.u32.totalorder %s744_s21, %s1083_s10 }
  0x5d   : > { %p747_p5 = pnand %p746_p11, %p745_p9 }
  0x5e   : > { %p752_p10 = por %p751_p4, %p750_p0 }
  0x5f   : > { %p748_p13 = pneg %p747_p5 }
  0x60   : > { %p754_p7 = por %p753_p3, %p752_p10 }
  0x62   : > { %p755_p6 = pnand %p754_p7, %p748_p13 }
  0x64   : > { %758 = shalt.err (!%p755_p6)
}
  0x65   : > { %s759_s30 = scalar_lea.vmem %s1086_s22, 256  ;;  %s886_s5 = smov [#allocation7]  }
  0x66   : > { %p760_p8 = scmp.ne.s32.totalorder %s1086_s22, %s759_s30  ;;  %s764_s29 = sshll.u32 %s886_s5, 4  ;;  %s765_s29 = int_to_ptr.vmem [resolvable:$false] %s764_s29 }
  0x67   : > { %s766_s26 = scalar_lea.vmem %s765_s29, 512  ;;  %p767_p1 = scmp.lt.s32.totalorder %s1086_s22, %s765_s29 }
  0x68   : > { %p762_p9 = pnand %p760_p8, %p746_p11  ;;  %p768_p0 = scmp.lt.s32.totalorder %s766_s26, %s759_s30 }
  0x6a   : > { %p763_p5 = pneg %p762_p9  ;;  %p769_p4 = por %p768_p0, %p767_p1 }
  0x6c   : > { %p770_p10 = pnand %p769_p4, %p763_p5 }
  0x6e   : > { %773 = shalt.err (!%p770_p10)
}
  0x6f   : > { %s1235_s21 = smov 8   ;;  %s1236_s0 = smov 128  }
  0x70   : > { %607 = dma.hbm_to_vmem [thread:$0]  (!%p999_p2), %s1083_s10, 256, %s1086_s22, %s1088_s23, %s1236_s0, %s1236_s0, %s1235_s21  }
  0x71   : > { %s1237_s1 = sadd.s32 1, %s860_s14  ;;  %p1238_p11 = scmp.eq.s32.totalorder %s1078_s7, 0 }
  0x72   : > { %197 = sbr.rel (%p982_p12) target bundleno = 579 (0x243), region = 32  ;;  %p1239_p1 = scmp.eq.s32.totalorder (!%p982_p12), %s951_s20, 0 }
  0x73   : > { %s1124_s4 = scalar_select %p1238_p11, %s860_s14, %s1237_s1  }
  0x79   : > { %835 = dma.done.wait (%p1239_p1), [#allocation3], 256   ;;  %p1240_p13 = pmov %p1239_p1 }
  0x7a   : > { %p1241_p3 = pmov %p1239_p1 }
  0x7b   : > { %837 = vsyncadd (%p1240_p13), [#allocation3], 4294967040 }
  0x7c   : > { %839 = dma.done.wait (%p1241_p3), [#allocation6], 256   ;;  %p1242_p7 = pmov %p1239_p1 }
  0x7d   : > { %s207_s6 = sand.u32 1, %s951_s20   ;;  %s209_s7 = sand.u32 1, %s856_s13  }
  0x7e   : > { %841 = vsyncadd (%p1242_p7), [#allocation6], 4294967040  ;;  %s542_s27 = sshll.u32 %s209_s7, 4  ;;  %s208_s22 = scalar_lea.sflag [#allocation3], %s207_s6 }
  0x7f   : > { %s211_s10 = scalar_lea.vmem [#allocation7], %s542_s27  ;;  %p1243_p12 = scmp.ne.s32.totalorder %s1226_s24, 0 }
  0x81   : > { %843 = dma.done.wait (%p1243_p12), %s208_s22, 256  }
  0x82   : > { %845 = vsyncadd (%p1243_p12), %s208_s22, 4294967040  ;;  %vm238_vm0 = vcmask 130048   ;;  %v236_v0 = vld [vmem:[%s211_s10] sm:$0xff]  ;;  %v237_v1 = vld [vmem:[%s211_s10 + $0x8] sm:$0xff]  ;;  %s584_s20 = smul.u32 6, %s868_s16  ;;  %s549_s24 = sshll.u32 %s864_s15, 1 }
  0x83   : > { %v234_v2 = vld [vmem:[#allocation2] sm:$0xff]  ;;  %v575_v3 = vpack.c.bf16 %v237_v1, %v236_v0  ;;  %v320_v4 = vld [vmem:[#allocation5] sm:$0xff]  ;;  %v321_v5 = vld [vmem:[#allocation5 + $0x8] sm:$0xff]  ;;  %s233_s11 = scalar_lea.vmem [#allocation8], %s542_s27  ;;  %s1161_s15 = scalar_lea.sflag [#allocation4], %s209_s7 }
  0x84   : > { %565 = vmatprep.mubr.msk.f32.mxu0 %vm238_vm0, %v234_v2  ;;  %v579_v6 = vpack.c.bf16 %v321_v5, %v320_v4  ;;  %v235_v7 = vld [vmem:[#allocation2 + $0x8] sm:$0xff]  ;;  %s418_s23 = sadd.s32 %s584_s20, %s549_s24  ;;  %s421_s28 = sshll.u32 %s233_s11, 4  ;;  %s1150_s28 = int_to_ptr.vmem [resolvable:$true] %s421_s28 }
  0x85   : > { %576 = vmatprep.subr.bf16.mxu0 %v575_v3  ;;  %s550_s30 = sshll.u32 %s418_s23, 7  ;;  %s774_s16 = scalar_lea.vmem %s1150_s28, 256 }
  0x86   : > { %578 = vmatpush3.bf16.msra.mxu0 %v575_v3  ;;  %580 = vmatprep.subr.bf16.mxu1 %v579_v6  ;;  %s1155_s26 = scalar_lea.hbm %s1216_s3, %s550_s30  ;;  %p775_p2 = scmp.ne.s32.totalorder %s1150_s28, %s774_s16 }
  0x87   : > { %582 = vmatpush3.bf16.msra.mxu1 %v579_v6  ;;  %p1244_p6 = scmp.ne.s32.totalorder %s1227_s25, 0  ;;  %s887_s21 = smov [#allocation8]  }
  0x88   : > { %s778_s0 = sshll.u32 %s887_s21, 4  ;;  %s779_s0 = int_to_ptr.vmem [resolvable:$false] %s778_s0 }
  0x89   : > { %566 = vmatmul.mubr.msk.f32.vlgmr.msra.gmra.mrb[0].mxu0 %vm238_vm0, %v235_v7  ;;  %p776_p8 = pnand %p775_p2, %p1244_p6  ;;  %s780_s1 = scalar_lea.vmem %s779_s0, 512 }
  0x8a   : > { %p781_p5 = scmp.lt.s32.totalorder %s1150_s28, %s779_s0  ;;  %p782_p0 = scmp.lt.s32.totalorder %s780_s1, %s774_s16 }
  0x8b   : > { %p777_p9 = pneg %p776_p8 }
  0x8c   : > { %p783_p4 = por %p782_p0, %p781_p5 }
  0x8e   : > { %p784_p10 = pnand %p783_p4, %p777_p9 }
 0x15c   : > { %v567_v8 = vpop.f32.mrb[0].mxu0 }
 0x15d   : > { %v311_v9 = vpop.f32.mrb[1].mxu0 }
 0x15e   : > { %572 = vmatprep.mubr.msk.f32.mxu1 %vm238_vm0, %v311_v9 }
 0x15f   : > { %573 = vmatmul.mubr.msk.f32.vlgmr.msra.gmra.mrb[0].mxu1 %vm238_vm0, %v567_v8 }
 0x232   : > { %v574_v10 = vpop.f32.mrb[0].mxu1 }
 0x233   : > { %404 = vst.msk [vmem:[%s233_s11 + $0x8] sm:$0xff] %vm238_vm0, %v574_v10  ;;  %v394_v11 = vpop.f32.mrb[1].mxu1 }
 0x234   : > { %403 = vst.msk [vmem:[%s233_s11] sm:$0xff] %vm238_vm0, %v394_v11 }
 0x235   : > { %787 = shalt.err (!%p784_p10)
}
 0x236   : > { %s788_s6 = scalar_lea.hbm %s1155_s26, 256  ;;  %s792_s22 = scalar_lea.hbm %s1216_s3, 1536 }
 0x237   : > { %p789_p11 = scmp.ne.s32.totalorder %s1155_s26, %s788_s6  ;;  %p793_p3 = scmp.lt.u32.totalorder %s1155_s26, %s1216_s3 }
 0x238   : > { %p794_p7 = scmp.lt.u32.totalorder %s792_s22, %s788_s6  ;;  %p796_p2 = scmp.lt.u32.totalorder %s788_s6, %s1155_s26 }
 0x239   : > { %p790_p1 = pnand %p789_p11, %p1244_p6 }
 0x23a   : > { %p795_p12 = por %p794_p7, %p793_p3 }
 0x23b   : > { %p791_p13 = pneg %p790_p1 }
 0x23c   : > { %p797_p8 = por %p796_p2, %p795_p12 }
 0x23e   : > { %p798_p9 = pnand %p797_p8, %p791_p13 }
 0x240   : > { %801 = shalt.err (!%p798_p9)
}
 0x241   : > { %s888_s24 = smov 128   ;;  %s889_s23 = smov 8  }
 0x242   : > { %595 = dma.vmem_to_hbm [thread:$0]  (%p1244_p6), %s1150_s28, 256, %s1155_s26, %s1161_s15, %s888_s24, %s888_s24, %s889_s23  }
 0x243 PF: > { %s1245_s11 = sld [smem:[#allocation13_spill]]  ;;  %p617_p5 = scmp.ge.s32.totalorder %s880_s19, 2 }
 0x244   : > { %s436_s30 = sand.u32 1, %s852_s12  }
 0x245   : > { %s437_s5 = scalar_lea.sflag [#allocation4], %s436_s30 }
 0x249   : > { %p1246_p0 = scmp.ne.s32.totalorder %s1245_s11, 0 }
 0x24b   : > { %p609_p4 = pnand %p617_p5, %p1246_p0 }
 0x24d   : > { %847 = dma.done.wait (!%p609_p4), %s437_s5, 256  }
 0x24e   : > { %849 = vsyncadd (!%p609_p4), %s437_s5, 4294967040  ;;  %s18_s19 = sadd.s32 1, %s880_s19   ;;  %s1247_s12 = smov %s856_s13 }
 0x24f   : > { %p15_p10 = scmp.ge.s32.totalorder %s18_s19, 8   ;;  %s1248_s13 = smov %s860_s14 }
 0x250   : > { %s1249_s14 = smov %s1124_s4  ;;  %s1250_s15 = smov %s872_s17 }
 0x251   : > { %s1251_s16 = smov %s876_s18  ;;  %s1252_s17 = smov %s1255_s8 }
 0x252   : > { %s1253_s18 = smov %s1259_s9  ;;  %17 = sbr.rel (!%p15_p10) target bundleno = 10 (0xa), region = 84 }
 0x259   :  { %442 = vsyncpa [#allocation3], 1 }
 0x25a   :  { %444 = vsyncpa [#allocation3 + $0x1], 1 }
 0x25b   :  { %445 = vsyncpa [#allocation6], 1 }
 0x25c   :  { %446 = vsyncpa [#allocation4], 1 }
 0x25d   :  { %448 = vsyncpa [#allocation4 + $0x1], 1 }

</bundles_post_ra>
